<compile_context>
chip_gen: v5e
topology: v5e:2x2
jax: 0.10.0
libtpu: 0.0.40
codegen_flags: <defaults>
</compile_context>

<pallas_src>
import math

import jax
import jax.numpy as jnp
from jax import lax
from jax.experimental import pallas as pl
from jax.experimental.pallas import tpu as pltpu

KERNEL = 3   # nn.MaxPool2d(kernel_size=3)
STRIDE = 3   # PyTorch: stride defaults to kernel_size
_LANE = 128


def _round_up(a, b):
    return -(-a // b) * b


def _out_dim(d, k=KERNEL, s=STRIDE):
    # ceil_mode=True output size (with PyTorch's "last window must start
    # inside the input" correction, a no-op for kernel == stride).
    o = math.ceil((d - k) / s) + 1
    if (o - 1) * s >= d:
        o -= 1
    return o


def _min_value(dtype):
    # Identity element for max (never -inf for integer dtypes).
    if jnp.issubdtype(dtype, jnp.floating):
        return float("-inf")
    return int(jnp.iinfo(dtype).min)


def _tpu_budgets():
    """(input-block VMEM budget, vmem_limit_bytes, multi_core) per generation."""
    try:
        info = pltpu.get_tpu_info()
        phys = int(info.vmem_capacity_bytes)
    except Exception:
        # Unknown chip: conservative settings that are safe everywhere.
        return 6 * 2**20, 32 * 2**20, False
    if phys >= 100 * 2**20:            # v5e / v6e: 128 MiB physical VMEM, 1 TC
        return 12 * 2**20, 64 * 2**20, False
    # v7x-class: 64 MiB per TensorCore, 2 TensorCores per chip.
    return 6 * 2**20, 32 * 2**20, True


def _make_kernel(h, w, hb, pad_rows, mask_rows, neg):
    def kernel(x_ref, o_ref):
        x = x_ref[...]                                     # (cb, hb, w)
        cb = x.shape[0]
        if mask_rows:
            # Last H block may overhang the real input (block padding and the
            # ceil_mode phantom rows); replace those rows with the identity.
            row = lax.broadcasted_iota(jnp.int32, x.shape, 1)
            row = row + pl.program_id(1) * hb
            x = jnp.where(row < h, x, neg)
        if pad_rows:
            # <=2 ceil_mode phantom rows appended in-registers (no HBM pad).
            x = jnp.concatenate(
                [x, jnp.full((cb, pad_rows, w), neg, x.dtype)], axis=1)
        rows = hb + pad_rows                               # multiple of 3
        ho_b = rows // STRIDE
        # ---- H reduction: group rows in threes, reduce each window (VPU/XLU,
        # lane dim untouched) ----
        x = x.reshape(cb, ho_b, STRIDE, w)
        x = jnp.max(x, axis=2)                             # (cb, ho_b, w)
        # ---- W sliding 3-tap max; the stride-3 decimation is deferred to a
        # tiny XLA slice on the 9x-smaller intermediate ----
        xp = jnp.concatenate(
            [x, jnp.full((cb, ho_b, KERNEL - 1), neg, x.dtype)], axis=2)
        m = jnp.maximum(xp[:, :, 0:w], xp[:, :, 1:w + 1])
        m = jnp.maximum(m, xp[:, :, 2:w + 2])
        o_ref[...] = m                                     # (cb, ho_b, w)
    return kernel


def max_pooling_forward(x):
    """Equivalent of Max_pooling.forward: MaxPool2d(kernel_size=3, ceil_mode=True)."""
    n, c, h, w = x.shape
    nc = n * c
    ho, wo = _out_dim(h), _out_dim(w)
    neg = _min_value(x.dtype)
    itemsize = jnp.dtype(x.dtype).itemsize
    sub = 8 * max(1, 4 // itemsize)        # sublane quantum for this dtype

    budget, vmem_limit, multi_core = _tpu_budgets()
    w_vmem = _round_up(w, _LANE)

    def in_block_bytes(cb_, hb_):
        # tile-padded VMEM footprint of one input block
        return cb_ * _round_up(hb_, sub) * w_vmem * itemsize

    if in_block_bytes(1, h) <= budget:
        # Whole H extent per block (hb == full dim -> always a legal tile);
        # the ceil_mode phantom rows are appended inside the kernel.
        hb, ho_b = h, ho
        pad_rows = STRIDE * ho - h
        mask_rows = False
        cb = int(min(nc, max(1, budget // in_block_bytes(1, hb))))
    else:
        # Very tall inputs: tile H in multiples of 3*sub rows so both the
        # input block (3*sub*k) and the output block (sub*k) stay tile-aligned.
        cb = 1
        k = int(max(1, budget // in_block_bytes(1, STRIDE * sub)))
        ho_b = int(min(sub * k, _round_up(ho, sub)))
        hb = STRIDE * ho_b
        pad_rows = 0
        mask_rows = True

    grid_c = pl.cdiv(nc, cb)
    grid_h = pl.cdiv(ho, ho_b)

    # Only split a 1-step grid when the part actually has >1 TensorCore
    # (v7x-class); on v5e/v6e it would just double per-step overhead.
    # Split along channels so the (sublane, lane) slab shape is unchanged.
    if multi_core and grid_c * grid_h < 2 and nc >= 2:
        cb = -(-nc // 2)
        grid_c = pl.cdiv(nc, cb)

    x3 = x.reshape(nc, h, w)               # free metadata reshape (no HBM pass)

    cost = pl.CostEstimate(
        flops=8 * nc * ho * w,
        transcendentals=0,
        bytes_accessed=(nc * h * w + nc * ho * w) * itemsize,
    )

    out3 = pl.pallas_call(
        _make_kernel(h, w, hb, pad_rows, mask_rows, neg),
        out_shape=jax.ShapeDtypeStruct((nc, ho, w), x.dtype),
        grid_spec=pltpu.PrefetchScalarGridSpec(
            num_scalar_prefetch=0,
            grid=(grid_c, grid_h),
            in_specs=[pl.BlockSpec((cb, hb, w), lambda ci, hi: (ci, hi, 0))],
            out_specs=pl.BlockSpec((cb, ho_b, w), lambda ci, hi: (ci, hi, 0)),
        ),
        compiler_params=pltpu.CompilerParams(
            dimension_semantics=("parallel", "parallel"),
            vmem_limit_bytes=vmem_limit,
        ),
        cost_estimate=cost,
    )(x3)

    # Stride-3 lane decimation on the small intermediate, then the free split
    # back to NCHW.
    y = out3[:, :, ::STRIDE]               # (nc, ho, wo)
    return y.reshape(n, c, ho, wo)


if __name__ == "__main__":
    key = jax.random.PRNGKey(0)
    x = jax.random.normal(key, (2, 4, 16, 16), dtype=jnp.float32)

    y = jax.block_until_ready(max_pooling_forward(x))

    # Pure-JAX reference of MaxPool2d(kernel_size=3, ceil_mode=True).
    n, c, h, w = x.shape
    ho, wo = _out_dim(h), _out_dim(w)
    ref = lax.reduce_window(
        x, -jnp.inf, lax.max,
        window_dimensions=(1, 1, KERNEL, KERNEL),
        window_strides=(1, 1, STRIDE, STRIDE),
        padding=((0, 0), (0, 0), (0, STRIDE * ho - h), (0, STRIDE * wo - w)),
    )

    assert y.shape == (2, 4, 6, 6), y.shape
    assert y.dtype == x.dtype
    assert jnp.allclose(y, ref), "mismatch vs reference"
    print("KERNEL_OK")
</pallas_src>

<mosaic_0001>
module attributes {stable_mosaic.version = 11 : i64} {
  func.func @kernel(%arg0: i32, %arg1: i32, %arg2: memref<8x16x16xf32, #tpu.memory_space<vmem>>, %arg3: memref<8x6x16xf32, #tpu.memory_space<vmem>>) attributes {dimension_semantics = [#tpu.dimension_semantics<parallel>, #tpu.dimension_semantics<parallel>], iteration_bounds = array<i64: 1, 1>, scalar_prefetch = 0 : i64, scratch_operands = 0 : i64, tpu.core_type = #tpu.core_type<tc>, window_params = [{transform_indices = @transform_0, window_bounds = array<i64: 8, 16, 16>}, {transform_indices = @transform_1, window_bounds = array<i64: 8, 6, 16>}]} {
    %c0 = arith.constant 0 : index
    %c0_0 = arith.constant 0 : index
    %c0_1 = arith.constant 0 : index
    %0 = vector.load %arg2[%c0, %c0_0, %c0_1] : memref<8x16x16xf32, #tpu.memory_space<vmem>>, vector<8x16x16xf32>
    %cst = arith.constant 0xFF800000 : f32
    %1 = vector.broadcast %cst : f32 to vector<8x2x16xf32>
    %2 = tpu.concatenate %0, %1 in 1 : vector<8x16x16xf32>, vector<8x2x16xf32> -> vector<8x18x16xf32>
    %3 = vector.shape_cast %2 : vector<8x18x16xf32> to vector<8x6x3x16xf32>
    %cst_2 = arith.constant dense<0xFF800000> : vector<8x6x16xf32>
    %4 = vector.multi_reduction <maximumf>, %3, %cst_2 [2] : vector<8x6x3x16xf32> to vector<8x6x16xf32>
    %cst_3 = arith.constant 0xFF800000 : f32
    %5 = vector.broadcast %cst_3 : f32 to vector<8x6x2xf32>
    %6 = tpu.concatenate %4, %5 in 2 : vector<8x6x16xf32>, vector<8x6x2xf32> -> vector<8x6x18xf32>
    %7 = vector.extract_strided_slice %6 {offsets = [0, 0, 0], sizes = [8, 6, 16], strides = [1, 1, 1]} : vector<8x6x18xf32> to vector<8x6x16xf32>
    %8 = vector.extract_strided_slice %6 {offsets = [0, 0, 1], sizes = [8, 6, 16], strides = [1, 1, 1]} : vector<8x6x18xf32> to vector<8x6x16xf32>
    %9 = arith.maximumf %7, %8 : vector<8x6x16xf32>
    %10 = vector.extract_strided_slice %6 {offsets = [0, 0, 2], sizes = [8, 6, 16], strides = [1, 1, 1]} : vector<8x6x18xf32> to vector<8x6x16xf32>
    %11 = arith.maximumf %9, %10 : vector<8x6x16xf32>
    %c0_4 = arith.constant 0 : index
    %c0_5 = arith.constant 0 : index
    %c0_6 = arith.constant 0 : index
    %12 = vector.load %arg3[%c0_4, %c0_5, %c0_6] : memref<8x6x16xf32, #tpu.memory_space<vmem>>, vector<8x6x16xf32>
    tpu.vector_store %arg3[%c0_4, %c0_5, %c0_6], %11 {strides = array<i32>} : memref<8x6x16xf32, #tpu.memory_space<vmem>>, vector<8x6x16xf32>,
    return
  }
  func.func @transform_0(%arg0: i32, %arg1: i32) -> (i32, i32, i32) {
    %c0_i32 = arith.constant 0 : i32
    %c0_i32_0 = arith.constant 0 : i32
    return %arg0, %arg1, %c0_i32 : i32, i32, i32
  }
  func.func @transform_1(%arg0: i32, %arg1: i32) -> (i32, i32, i32) {
    %c0_i32 = arith.constant 0 : i32
    %c0_i32_0 = arith.constant 0 : i32
    return %arg0, %arg1, %c0_i32 : i32, i32, i32
  }
}

</mosaic_0001>

<bundles_post_ra>
// kernel: tpu_custom_call.1
= control target key start
LH: loop header
LB: loop body
LE: loop exit
PB: predicated region body
PF: predicated region fallthrough
CT: control target
= control target key end

     0   :  { %6 = vsyncpa [#allocation3], 0  ;;  %s977_s9 = smov [#allocation2]   ;;  %s978_s11 = smov 128   ;;  %s1241_s0 = inlined_call_operand.hbm [shape: f32[8,16,16], index: 0, kind: input, shape index: {}]   ;;  %s1242_s1 = inlined_call_operand.vmem [shape: f32[8,6,16], index: 1, kind: output, shape index: {}]  }
   0x1   :  { %s11_s8 = sshll.u32 %s1241_s0, 4  ;;  %s13_s10 = sshll.u32 %s977_s9, 4  ;;  %s12_s8 = int_to_ptr.hbm [resolvable:$true] %s11_s8  ;;  %s14_s10 = int_to_ptr.vmem [resolvable:$true] %s13_s10 }
   0x2   :  { %s979_s12 = smov 8  }
   0x3   :  { %19 = dma.hbm_to_vmem [thread:$0]  %s12_s8, 2048, %s14_s10, [#allocation3], %s978_s11, %s978_s11, %s979_s12  }
   0x4   :  { %975 = dma.done.wait [#allocation3], 2048  }
   0x5   :  { %976 = vsyncadd [#allocation3], 4294965248  ;;  %v24_v0 = vld [vmem:[#allocation2] sm:$0xff]  ;;  %v25_v9 = vld [vmem:[#allocation2 + $0x8] sm:$0xff]  ;;  %vm412_vm0 = vcmask 124928   ;;  %v980_v34 = vmov -inf  }
   0x6   :  { %v57_v1 = vrot.slane %v24_v0, 1  ;;  %v58_v2 = vrot.slane %v24_v0, 2  ;;  %170 = vst [vmem:[#allocation1] ss:$9 sm:$0xff] %v24_v0  ;;  %v59_v3 = vrot.slane %v24_v0, 3  ;;  %v60_v4 = vrot.slane %v24_v0, 4 }
   0x7   :  { %v61_v5 = vrot.slane %v24_v0, 5  ;;  %v62_v7 = vrot.slane %v24_v0, 6  ;;  %v63_v8 = vrot.slane %v24_v0, 7  ;;  %v64_v11 = vrot.slane %v25_v9, 1  ;;  %v26_v47 = vld [vmem:[#allocation2 + $0x10] sm:$0xff]  ;;  %s981_s0 = smov 127  }
   0x8   :  { %172 = vst [vmem:[#allocation1 + $0x1] ss:$9 sm:$0xff] %v57_v1  ;;  %v65_v12 = vrot.slane %v25_v9, 2  ;;  %v66_v13 = vrot.slane %v25_v9, 3  ;;  %v67_v17 = vrot.slane %v25_v9, 4  ;;  %v68_v18 = vrot.slane %v25_v9, 5 }
   0x9   :  { %174 = vst [vmem:[#allocation1 + $0x2] ss:$9 sm:$0xff] %v58_v2  ;;  %v69_v22 = vrot.slane %v25_v9, 6  ;;  %v70_v32 = vrot.slane %v25_v9, 7  ;;  %v1001_v35 = vrot.slane %v980_v34, 1  ;;  %v72_v53 = vrot.slane %v26_v47, 1 }
   0xa   :  { %vm797_vm1 = vcmask 1041409   ;;  %v73_v55 = vrot.slane %v26_v47, 2  ;;  %vm799_vm2 = vcmask 1042434   ;;  %vm801_vm3 = vcmask 1043459   ;;  %s982_s13 = smov 126  }
   0xb   :  { %vm803_vm4 = vcmask 1044484   ;;  %vm805_vm5 = vcmask 1045509   ;;  %vm850_vm6 = vcmask 130048   ;;  %vm931_vm7 = vcmask 128000  }
  0x10   :  { %v175_v6 = vld [vmem:[#allocation1] sm:$0xff] }
  0x11   :  { %176 = vst [vmem:[#allocation1] ss:$9 sm:$0xff] %v59_v3  ;;  %v413_v15 = vsel %vm412_vm0, %v175_v6, -inf }
  0x12   :  { %177 = vst [vmem:[#allocation1 + $0x1] ss:$9 sm:$0xff] %v60_v4  ;;  %v414_v19 = vrot.slane %v413_v15, 4  ;;  %v74_v4 = vrot.slane %v26_v47, 3 }
  0x13   :  { %178 = vst [vmem:[#allocation1 + $0x2] ss:$9 sm:$0xff] %v61_v5 }
  0x14   :  { %v415_v26 = vmax.f32 %v413_v15, %v414_v19  ;;  %v77_v15 = vrot.slane %v26_v47, 6 }
  0x16   :  { %v416_v30 = vrot.slane %v415_v26, 2 }
  0x18   :  { %v417_v38 = vmax.f32 %v415_v26, %v416_v30 }
  0x1a   :  { %v179_v10 = vld [vmem:[#allocation1] sm:$0xff]  ;;  %v418_v44 = vrot.slane %v417_v38, 1 }
  0x1b   :  { %180 = vst [vmem:[#allocation1] ss:$9 sm:$0xff] %v62_v7  ;;  %v420_v16 = vsel %vm412_vm0, %v179_v10, -inf  ;;  %v75_v7 = vrot.slane %v26_v47, 4 }
  0x1c   :  { %181 = vst [vmem:[#allocation1 + $0x1] ss:$9 sm:$0xff] %v63_v8  ;;  %v421_v20 = vrot.slane %v420_v16, 4  ;;  %v419_v51 = vmax.f32 %v417_v38, %v418_v44  ;;  %v76_v8 = vrot.slane %v26_v47, 5 }
  0x1d   :  { %182 = vst [vmem:[#allocation1 + $0x2] ss:$9 sm:$0xff] %v25_v9 }
  0x1e   :  { %v422_v27 = vmax.f32 %v420_v16, %v421_v20  ;;  %v78_v16 = vrot.slane %v26_v47, 7 }
  0x20   :  { %v423_v31 = vrot.slane %v422_v27, 2 }
  0x22   :  { %v424_v39 = vmax.f32 %v422_v27, %v423_v31 }
  0x24   :  { %v183_v14 = vld [vmem:[#allocation1] sm:$0xff]  ;;  %v425_v45 = vrot.slane %v424_v39, 1 }
  0x25   :  { %184 = vst [vmem:[#allocation1] ss:$9 sm:$0xff] %v64_v11  ;;  %v427_v21 = vsel %vm412_vm0, %v183_v14, -inf }
  0x26   :  { %185 = vst [vmem:[#allocation1 + $0x1] ss:$9 sm:$0xff] %v65_v12  ;;  %v428_v24 = vrot.slane %v427_v21, 4  ;;  %v426_v52 = vmax.f32 %v424_v39, %v425_v45 }
  0x27   :  { %186 = vst [vmem:[#allocation1 + $0x2] ss:$9 sm:$0xff] %v66_v13 }
  0x28   :  { %v429_v29 = vmax.f32 %v427_v21, %v428_v24  ;;  %v798_v61 = vsel %vm797_vm1, %v426_v52, %v419_v51 }
  0x2a   :  { %v430_v36 = vrot.slane %v429_v29, 2 }
  0x2c   :  { %v431_v43 = vmax.f32 %v429_v29, %v430_v36  ;;  %v28_v29 = vld [vmem:[#allocation2 + $0x20] sm:$0xff] }
  0x2d   :  { %v86_v30 = vrot.slane %v28_v29, 1  ;;  %v87_v31 = vrot.slane %v28_v29, 2  ;;  %v89_v36 = vrot.slane %v28_v29, 4  ;;  %v91_v39 = vrot.slane %v28_v29, 6 }
  0x2e   :  { %v187_v23 = vld [vmem:[#allocation1] sm:$0xff]  ;;  %v432_v50 = vrot.slane %v431_v43, 1 }
  0x2f   :  { %188 = vst [vmem:[#allocation1] ss:$9 sm:$0xff] %v67_v17  ;;  %v434_v25 = vsel %vm412_vm0, %v187_v23, -inf  ;;  %v27_v17 = vld [vmem:[#allocation2 + $0x18] sm:$0xff] }
  0x30   :  { %189 = vst [vmem:[#allocation1 + $0x1] ss:$9 sm:$0xff] %v68_v18  ;;  %v435_v28 = vrot.slane %v434_v25, 4  ;;  %v433_v58 = vmax.f32 %v431_v43, %v432_v50  ;;  %v79_v19 = vrot.slane %v27_v17, 1  ;;  %v80_v20 = vrot.slane %v27_v17, 2 }
  0x31   :  { %190 = vst [vmem:[#allocation1 + $0x2] ss:$9 sm:$0xff] %v69_v22  ;;  %v81_v21 = vrot.slane %v27_v17, 3  ;;  %v82_v23 = vrot.slane %v27_v17, 4  ;;  %v83_v24 = vrot.slane %v27_v17, 5  ;;  %v85_v27 = vrot.slane %v27_v17, 7 }
  0x32   :  { %v436_v33 = vmax.f32 %v434_v25, %v435_v28  ;;  %v800_v1 = vsel %vm799_vm2, %v433_v58, %v798_v61  ;;  %v84_v25 = vrot.slane %v27_v17, 6 }
  0x34   :  { %v437_v41 = vrot.slane %v436_v33, 2 }
  0x36   :  { %v438_v48 = vmax.f32 %v436_v33, %v437_v41  ;;  %v88_v33 = vrot.slane %v28_v29, 3  ;;  %v29_v41 = vld [vmem:[#allocation2 + $0x28] sm:$0xff] }
  0x37   :  { %v93_v43 = vrot.slane %v29_v41, 1  ;;  %v94_v44 = vrot.slane %v29_v41, 2 }
  0x38   :  { %v191_v37 = vld [vmem:[#allocation1] sm:$0xff]  ;;  %v439_v57 = vrot.slane %v438_v48, 1 }
  0x39   :  { %192 = vst [vmem:[#allocation1] ss:$9 sm:$0xff] %v70_v32  ;;  %v441_v40 = vsel %vm412_vm0, %v191_v37, -inf  ;;  %v90_v37 = vrot.slane %v28_v29, 5 }
  0x3a   :  { %193 = vst [vmem:[#allocation1 + $0x1] ss:$9 sm:$0xff] %v980_v34  ;;  %v442_v42 = vrot.slane %v441_v40, 4  ;;  %v440_v63 = vmax.f32 %v438_v48, %v439_v57  ;;  %v98_v57 = vrot.slane %v29_v41, 6 }
  0x3b   :  { %194 = vst [vmem:[#allocation1 + $0x2] ss:$9 sm:$0xff] %v1001_v35 }
  0x3c   :  { %v443_v46 = vmax.f32 %v441_v40, %v442_v42  ;;  %v802_v6 = vsel %vm801_vm3, %v440_v63, %v800_v1  ;;  %v92_v40 = vrot.slane %v28_v29, 7  ;;  %v99_v63 = vrot.slane %v29_v41, 7 }
  0x3e   :  { %v444_v49 = vrot.slane %v443_v46, 2 }
  0x40   :  { %v445_v54 = vmax.f32 %v443_v46, %v444_v49  ;;  %v95_v46 = vrot.slane %v29_v41, 3 }
  0x42   :  { %v195_v56 = vld [vmem:[#allocation1] sm:$0xff]  ;;  %v446_v62 = vrot.slane %v445_v54, 1 }
  0x43   :  { %v448_v59 = vsel %vm412_vm0, %v195_v56, -inf  ;;  %196 = vst [vmem:[#allocation1] ss:$9 sm:$0xff] %v26_v47 }
  0x44   :  { %v449_v60 = vrot.slane %v448_v59, 4  ;;  %197 = vst [vmem:[#allocation1 + $0x1] ss:$9 sm:$0xff] %v72_v53  ;;  %v447_v3 = vmax.f32 %v445_v54, %v446_v62  ;;  %v96_v54 = vrot.slane %v29_v41, 4 }
  0x45   :  { %198 = vst [vmem:[#allocation1 + $0x2] ss:$9 sm:$0xff] %v73_v55  ;;  %v97_v55 = vrot.slane %v29_v41, 5 }
  0x46   :  { %v450_v0 = vmax.f32 %v448_v59, %v449_v60  ;;  %v804_v11 = vsel %vm803_vm4, %v447_v3, %v802_v6 }
  0x48   :  { %v451_v2 = vrot.slane %v450_v0, 2 }
  0x4a   :  { %v452_v5 = vmax.f32 %v450_v0, %v451_v2 }
  0x4c   :  { %v453_v9 = vrot.slane %v452_v5, 1  ;;  %v1010_v10 = vld [vmem:[#allocation1] sm:$0xff] }
  0x4d   :  { %200 = vst [vmem:[#allocation1] ss:$9 sm:$0xff] %v74_v4  ;;  %v455_v3 = vsel %vm412_vm0, %v1010_v10, -inf }
  0x4e   :  { %v454_v12 = vmax.f32 %v452_v5, %v453_v9  ;;  %201 = vst [vmem:[#allocation1 + $0x1] ss:$9 sm:$0xff] %v75_v7  ;;  %v456_v5 = vrot.slane %v455_v3, 4 }
  0x4f   :  { %202 = vst [vmem:[#allocation1 + $0x2] ss:$9 sm:$0xff] %v76_v8 }
  0x50   :  { %v806_v13 = vsel %vm805_vm5, %v454_v12, %v804_v11 }
  0x51   :  { %v1015_v14 = vsel %vm850_vm6, %v806_v13, -inf }
  0x52   :  { %867 = vrot.lane.b32.xlu0 %v1015_v14, %s981_s0  ;;  %899 = vrot.lane.b32.xlu2 %v1015_v14, %s982_s13 }
  0x56   :  { %v1021_v18 = vld [vmem:[#allocation1] sm:$0xff] }
  0x57   :  { %204 = vst [vmem:[#allocation1] ss:$9 sm:$0xff] %v77_v15  ;;  %v462_v4 = vsel %vm412_vm0, %v1021_v18, -inf  ;;  %v457_v15 = vmax.f32 %v455_v3, %v456_v5 }
  0x58   :  { %205 = vst [vmem:[#allocation1 + $0x1] ss:$9 sm:$0xff] %v78_v16  ;;  %v463_v6 = vrot.slane %v462_v4, 4 }
  0x59   :  { %206 = vst [vmem:[#allocation1 + $0x2] ss:$9 sm:$0xff] %v27_v17 }
  0x5a   :  { %v464_v16 = vmax.f32 %v462_v4, %v463_v6 }
  0x60   :  { %v1023_v22 = vld [vmem:[#allocation1] sm:$0xff] }
  0x61   :  { %208 = vst [vmem:[#allocation1] ss:$9 sm:$0xff] %v79_v19  ;;  %v469_v7 = vsel %vm412_vm0, %v1023_v22, -inf }
  0x62   :  { %209 = vst [vmem:[#allocation1 + $0x1] ss:$9 sm:$0xff] %v80_v20  ;;  %v470_v11 = vrot.slane %v469_v7, 4 }
  0x63   :  { %210 = vst [vmem:[#allocation1 + $0x2] ss:$9 sm:$0xff] %v81_v21 }
  0x64   :  { %v471_v19 = vmax.f32 %v469_v7, %v470_v11 }
  0x6a   :  { %v1025_v26 = vld [vmem:[#allocation1] sm:$0xff] }
  0x6b   :  { %212 = vst [vmem:[#allocation1] ss:$9 sm:$0xff] %v82_v23  ;;  %v476_v8 = vsel %vm412_vm0, %v1025_v26, -inf  ;;  %v458_v23 = vrot.slane %v457_v15, 2 }
  0x6c   :  { %213 = vst [vmem:[#allocation1 + $0x1] ss:$9 sm:$0xff] %v83_v24  ;;  %v477_v12 = vrot.slane %v476_v8, 4  ;;  %v465_v24 = vrot.slane %v464_v16, 2 }
  0x6d   :  { %214 = vst [vmem:[#allocation1 + $0x2] ss:$9 sm:$0xff] %v84_v25 }
  0x6e   :  { %v478_v20 = vmax.f32 %v476_v8, %v477_v12 }
  0x74   :  { %v1027_v28 = vld [vmem:[#allocation1] sm:$0xff] }
  0x75   :  { %216 = vst [vmem:[#allocation1] ss:$9 sm:$0xff] %v85_v27  ;;  %v483_v13 = vsel %vm412_vm0, %v1027_v28, -inf }
  0x76   :  { %217 = vst [vmem:[#allocation1 + $0x1] ss:$9 sm:$0xff] %v980_v34  ;;  %v484_v10 = vrot.slane %v483_v13, 4 }
  0x77   :  { %218 = vst [vmem:[#allocation1 + $0x2] ss:$9 sm:$0xff] %v1001_v35 }
  0x78   :  { %v485_v25 = vmax.f32 %v483_v13, %v484_v10 }
  0x7e   :  { %v219_v32 = vld [vmem:[#allocation1] sm:$0xff] }
  0x7f   :  { %220 = vst [vmem:[#allocation1] ss:$9 sm:$0xff] %v28_v29  ;;  %v490_v17 = vsel %vm412_vm0, %v219_v32, -inf  ;;  %v472_v29 = vrot.slane %v471_v19, 2  ;;  %v486_v32 = vrot.slane %v485_v25, 2 }
  0x80   :  { %221 = vst [vmem:[#allocation1 + $0x1] ss:$9 sm:$0xff] %v86_v30  ;;  %v491_v21 = vrot.slane %v490_v17, 4  ;;  %v479_v30 = vrot.slane %v478_v20, 2 }
  0x81   :  { %222 = vst [vmem:[#allocation1 + $0x2] ss:$9 sm:$0xff] %v87_v31 }
  0x82   :  { %v492_v31 = vmax.f32 %v490_v17, %v491_v21 }
  0x88   :  { %v223_v38 = vld [vmem:[#allocation1] sm:$0xff] }
  0x89   :  { %224 = vst [vmem:[#allocation1] ss:$9 sm:$0xff] %v88_v33  ;;  %v497_v45 = vsel %vm412_vm0, %v223_v38, -inf  ;;  %v459_v33 = vmax.f32 %v457_v15, %v458_v23 }
  0x8a   :  { %225 = vst [vmem:[#allocation1 + $0x1] ss:$9 sm:$0xff] %v89_v36  ;;  %v498_v49 = vrot.slane %v497_v45, 4  ;;  %v466_v36 = vmax.f32 %v464_v16, %v465_v24 }
  0x8b   :  { %226 = vst [vmem:[#allocation1 + $0x2] ss:$9 sm:$0xff] %v90_v37 }
  0x8c   :  { %v499_v51 = vmax.f32 %v497_v45, %v498_v49 }
  0x8e   :  { %v500_v58 = vrot.slane %v499_v51, 2 }
  0x90   :  { %v1035_v0 = vmax.f32 %v499_v51, %v500_v58 }
  0x92   :  { %v227_v42 = vld [vmem:[#allocation1] sm:$0xff]  ;;  %v502_v22 = vrot.slane %v1035_v0, 1 }
  0x93   :  { %228 = vst [vmem:[#allocation1] ss:$9 sm:$0xff] %v91_v39  ;;  %v504_v47 = vsel %vm412_vm0, %v227_v42, -inf  ;;  %v473_v39 = vmax.f32 %v471_v19, %v472_v29  ;;  %v467_v42 = vrot.slane %v466_v36, 1 }
  0x94   :  { %229 = vst [vmem:[#allocation1 + $0x1] ss:$9 sm:$0xff] %v92_v40  ;;  %v505_v50 = vrot.slane %v504_v47, 4  ;;  %v480_v40 = vmax.f32 %v478_v20, %v479_v30 }
  0x95   :  { %230 = vst [vmem:[#allocation1 + $0x2] ss:$9 sm:$0xff] %v29_v41  ;;  %v460_v41 = vrot.slane %v459_v33, 1 }
  0x96   :  { %v506_v53 = vmax.f32 %v504_v47, %v505_v50  ;;  %v474_v47 = vrot.slane %v473_v39, 1  ;;  %v468_v50 = vmax.f32 %v466_v36, %v467_v42 }
  0x97   :  { %v461_v49 = vmax.f32 %v459_v33, %v460_v41 }
  0x98   :  { %v507_v60 = vrot.slane %v506_v53, 2 }
  0x9a   :  { %v508_v1 = vmax.f32 %v506_v53, %v507_v60  ;;  %v30_v53 = vld [vmem:[#allocation2 + $0x30] sm:$0xff] }
  0x9b   :  { %v100_v3 = vrot.slane %v30_v53, 1  ;;  %v101_v7 = vrot.slane %v30_v53, 2  ;;  %v105_v36 = vrot.slane %v30_v53, 6 }
  0x9c   :  { %v231_v48 = vld [vmem:[#allocation1] sm:$0xff]  ;;  %v509_v45 = vrot.slane %v508_v1, 1 }
  0x9d   :  { %232 = vst [vmem:[#allocation1] ss:$9 sm:$0xff] %v93_v43  ;;  %v511_v52 = vsel %vm412_vm0, %v231_v48, -inf  ;;  %v487_v43 = vmax.f32 %v485_v25, %v486_v32  ;;  %v481_v48 = vrot.slane %v480_v40, 1  ;;  %v103_v25 = vrot.slane %v30_v53, 4 }
  0x9e   :  { %233 = vst [vmem:[#allocation1 + $0x1] ss:$9 sm:$0xff] %v94_v44  ;;  %v512_v56 = vrot.slane %v511_v52, 4  ;;  %v493_v44 = vrot.slane %v492_v31, 2  ;;  %v106_v32 = vrot.slane %v30_v53, 7 }
  0x9f   :  { %234 = vst [vmem:[#allocation1 + $0x2] ss:$9 sm:$0xff] %v95_v46  ;;  %v488_v51 = vrot.slane %v487_v43, 1 }
  0xa0   :  { %v513_v62 = vmax.f32 %v511_v52, %v512_v56  ;;  %v494_v52 = vmax.f32 %v492_v31, %v493_v44  ;;  %v475_v56 = vmax.f32 %v473_v39, %v474_v47 }
  0xa2   :  { %v514_v9 = vrot.slane %v513_v62, 2  ;;  %v495_v60 = vrot.slane %v494_v52, 1 }
  0xa4   :  { %v515_v27 = vmax.f32 %v513_v62, %v514_v9  ;;  %v503_v62 = vmax.f32 %v1035_v0, %v502_v22  ;;  %v496_v5 = vmax.f32 %v494_v52, %v495_v60  ;;  %v102_v22 = vrot.slane %v30_v53, 3 }
  0xa6   :  { %v235_v59 = vld [vmem:[#allocation1] sm:$0xff]  ;;  %v516_v58 = vrot.slane %v515_v27, 1 }
  0xa7   :  { %236 = vst [vmem:[#allocation1] ss:$9 sm:$0xff] %v96_v54  ;;  %v518_v61 = vsel %vm412_vm0, %v235_v59, -inf  ;;  %v489_v59 = vmax.f32 %v487_v43, %v488_v51 }
  0xa8   :  { %237 = vst [vmem:[#allocation1 + $0x1] ss:$9 sm:$0xff] %v97_v55  ;;  %v519_v2 = vrot.slane %v518_v61, 4  ;;  %v517_v12 = vmax.f32 %v515_v27, %v516_v58 }
  0xa9   :  { %238 = vst [vmem:[#allocation1 + $0x2] ss:$9 sm:$0xff] %v98_v57  ;;  %v482_v57 = vmax.f32 %v480_v40, %v481_v48 }
  0xaa   :  { %v520_v18 = vmax.f32 %v518_v61, %v519_v2  ;;  %v807_v61 = vsel %vm797_vm1, %v468_v50, %v461_v49 }
  0xab   :  { %v808_v2 = vsel %vm799_vm2, %v475_v56, %v807_v61 }
  0xac   :  { %v521_v37 = vrot.slane %v520_v18, 2  ;;  %v809_v6 = vsel %vm801_vm3, %v482_v57, %v808_v2 }
  0xad   :  { %v810_v11 = vsel %vm803_vm4, %v489_v59, %v809_v6 }
  0xae   :  { %v522_v54 = vmax.f32 %v520_v18, %v521_v37  ;;  %v811_v15 = vsel %vm805_vm5, %v496_v5, %v810_v11  ;;  %v31_v37 = vld [vmem:[#allocation2 + $0x38] sm:$0xff] }
  0xaf   :  { %v1061_v16 = vsel %vm850_vm6, %v811_v15, -inf  ;;  %v107_v39 = vrot.slane %v31_v37, 1  ;;  %v108_v40 = vrot.slane %v31_v37, 2  ;;  %v109_v41 = vrot.slane %v31_v37, 3 }
  0xb0   :  { %v239_v26 = vld [vmem:[#allocation1] sm:$0xff]  ;;  %v523_v9 = vrot.slane %v522_v54, 1  ;;  %869 = vrot.lane.b32.xlu0 %v1061_v16, %s981_s0  ;;  %v112_v50 = vrot.slane %v31_v37, 6  ;;  %v113_v60 = vrot.slane %v31_v37, 7 }
  0xb1   :  { %240 = vst [vmem:[#allocation1] ss:$9 sm:$0xff] %v99_v63  ;;  %v525_v28 = vsel %vm412_vm0, %v239_v26, -inf  ;;  %v510_v63 = vmax.f32 %v508_v1, %v509_v45  ;;  %v104_v26 = vrot.slane %v30_v53, 5  ;;  %v110_v45 = vrot.slane %v31_v37, 4 }
  0xb2   :  { %241 = vst [vmem:[#allocation1 + $0x1] ss:$9 sm:$0xff] %v980_v34  ;;  %v526_v38 = vrot.slane %v525_v28, 4  ;;  %v524_v17 = vmax.f32 %v522_v54, %v523_v9 }
  0xb3   :  { %242 = vst [vmem:[#allocation1 + $0x2] ss:$9 sm:$0xff] %v1001_v35  ;;  %v812_v1 = vsel %vm797_vm1, %v510_v63, %v503_v62 }
  0xb4   :  { %v527_v46 = vmax.f32 %v525_v28, %v526_v38  ;;  %v813_v19 = vsel %vm799_vm2, %v517_v12, %v812_v1  ;;  %v32_v12 = vld [vmem:[#allocation2 + $0x40] sm:$0xff] }
  0xb5   :  { %v814_v24 = vsel %vm801_vm3, %v524_v17, %v813_v19  ;;  %v114_v17 = vrot.slane %v32_v12, 1  ;;  %v115_v19 = vrot.slane %v32_v12, 2 }
  0xb6   :  { %v528_v55 = vrot.slane %v527_v46, 2 }
  0xb8   :  { %v529_v4 = vmax.f32 %v527_v46, %v528_v55  ;;  %901 = vrot.lane.b32.xlu0 %v1061_v16, %s982_s13  ;;  %v111_v46 = vrot.slane %v31_v37, 5 }
  0xba   :  { %v243_v8 = vld [vmem:[#allocation1] sm:$0xff]  ;;  %v530_v10 = vrot.slane %v529_v4, 1 }
  0xbb   :  { %v532_v13 = vsel %vm412_vm0, %v243_v8, -inf  ;;  %244 = vst [vmem:[#allocation1] ss:$9 sm:$0xff] %v30_v53 }
  0xbc   :  { %v533_v0 = vrot.slane %v532_v13, 4  ;;  %245 = vst [vmem:[#allocation1 + $0x1] ss:$9 sm:$0xff] %v100_v3  ;;  %v531_v21 = vmax.f32 %v529_v4, %v530_v10 }
  0xbd   :  { %246 = vst [vmem:[#allocation1 + $0x2] ss:$9 sm:$0xff] %v101_v7 }
  0xbe   :  { %v534_v18 = vmax.f32 %v532_v13, %v533_v0  ;;  %v815_v30 = vsel %vm803_vm4, %v531_v21, %v814_v24 }
  0xc0   :  { %v535_v20 = vrot.slane %v534_v18, 2 }
  0xc2   :  { %v536_v23 = vmax.f32 %v534_v18, %v535_v20 }
  0xc4   :  { %v537_v27 = vrot.slane %v536_v23, 1  ;;  %v247_v29 = vld [vmem:[#allocation1] sm:$0xff] }
  0xc5   :  { %248 = vst [vmem:[#allocation1] ss:$9 sm:$0xff] %v102_v22  ;;  %v539_v43 = vsel %vm412_vm0, %v247_v29, -inf }
  0xc6   :  { %v538_v31 = vmax.f32 %v536_v23, %v537_v27  ;;  %249 = vst [vmem:[#allocation1 + $0x1] ss:$9 sm:$0xff] %v103_v25  ;;  %v540_v47 = vrot.slane %v539_v43, 4 }
  0xc7   :  { %250 = vst [vmem:[#allocation1 + $0x2] ss:$9 sm:$0xff] %v104_v26 }
  0xc8   :  { %v816_v28 = vsel %vm805_vm5, %v538_v31, %v815_v30  ;;  %v541_v54 = vmax.f32 %v539_v43, %v540_v47  ;;  %v120_v47 = vrot.slane %v32_v12, 7 }
  0xc9   :  { %v1072_v33 = vsel %vm850_vm6, %v816_v28, -inf }
  0xca   :  { %871 = vrot.lane.b32.xlu1 %v1072_v33, %s981_s0  ;;  %v542_v58 = vrot.slane %v541_v54, 2 }
  0xcc   :  { %v543_v2 = vmax.f32 %v541_v54, %v542_v58 }
  0xce   :  { %v251_v38 = vld [vmem:[#allocation1] sm:$0xff]  ;;  %v544_v8 = vrot.slane %v543_v2, 1 }
  0xcf   :  { %252 = vst [vmem:[#allocation1] ss:$9 sm:$0xff] %v105_v36  ;;  %v546_v44 = vsel %vm412_vm0, %v251_v38, -inf  ;;  %v116_v36 = vrot.slane %v32_v12, 3  ;;  %v117_v38 = vrot.slane %v32_v12, 4 }
  0xd0   :  { %253 = vst [vmem:[#allocation1 + $0x1] ss:$9 sm:$0xff] %v106_v32  ;;  %v547_v48 = vrot.slane %v546_v44, 4  ;;  %v545_v1 = vmax.f32 %v543_v2, %v544_v8 }
  0xd1   :  { %254 = vst [vmem:[#allocation1 + $0x2] ss:$9 sm:$0xff] %v31_v37 }
  0xd2   :  { %903 = vrot.lane.b32.xlu1 %v1072_v33, %s982_s13  ;;  %v548_v55 = vmax.f32 %v546_v44, %v547_v48  ;;  %v33_v48 = vld [vmem:[#allocation2 + $0x48] sm:$0xff] }
  0xd4   :  { %v549_v59 = vrot.slane %v548_v55, 2 }
  0xd6   :  { %v550_v3 = vmax.f32 %v548_v55, %v549_v59 }
  0xd8   :  { %v255_v42 = vld [vmem:[#allocation1] sm:$0xff]  ;;  %v551_v9 = vrot.slane %v550_v3, 1 }
  0xd9   :  { %256 = vst [vmem:[#allocation1] ss:$9 sm:$0xff] %v107_v39  ;;  %v553_v49 = vsel %vm412_vm0, %v255_v42, -inf  ;;  %v118_v39 = vrot.slane %v32_v12, 5 }
  0xda   :  { %257 = vst [vmem:[#allocation1 + $0x1] ss:$9 sm:$0xff] %v108_v40  ;;  %v554_v52 = vrot.slane %v553_v49, 4  ;;  %v552_v10 = vmax.f32 %v550_v3, %v551_v9  ;;  %v127_v9 = vrot.slane %v33_v48, 7 }
  0xdb   :  { %258 = vst [vmem:[#allocation1 + $0x2] ss:$9 sm:$0xff] %v109_v41 }
  0xdc   :  { %v555_v57 = vmax.f32 %v553_v49, %v554_v52  ;;  %v817_v25 = vsel %vm797_vm1, %v552_v10, %v545_v1  ;;  %v123_v52 = vrot.slane %v33_v48, 3 }
  0xde   :  { %v556_v62 = vrot.slane %v555_v57, 2 }
  0xe0   :  { %v557_v7 = vmax.f32 %v555_v57, %v556_v62  ;;  %v125_v57 = vrot.slane %v33_v48, 5 }
  0xe2   :  { %v259_v51 = vld [vmem:[#allocation1] sm:$0xff]  ;;  %v558_v0 = vrot.slane %v557_v7, 1 }
  0xe3   :  { %260 = vst [vmem:[#allocation1] ss:$9 sm:$0xff] %v110_v45  ;;  %v560_v53 = vsel %vm412_vm0, %v259_v51, -inf  ;;  %v122_v51 = vrot.slane %v33_v48, 2 }
  0xe4   :  { %261 = vst [vmem:[#allocation1 + $0x1] ss:$9 sm:$0xff] %v111_v46  ;;  %v561_v56 = vrot.slane %v560_v53, 4  ;;  %v559_v22 = vmax.f32 %v557_v7, %v558_v0  ;;  %v119_v46 = vrot.slane %v32_v12, 6 }
  0xe5   :  { %262 = vst [vmem:[#allocation1 + $0x2] ss:$9 sm:$0xff] %v112_v50  ;;  %v121_v50 = vrot.slane %v33_v48, 1 }
  0xe6   :  { %v562_v61 = vmax.f32 %v560_v53, %v561_v56  ;;  %v818_v30 = vsel %vm799_vm2, %v559_v22, %v817_v25  ;;  %v124_v56 = vrot.slane %v33_v48, 4  ;;  %v34_v22 = vld [vmem:[#allocation2 + $0x50] sm:$0xff] }
  0xe8   :  { %v563_v5 = vrot.slane %v562_v61, 2 }
  0xea   :  { %v564_v13 = vmax.f32 %v562_v61, %v563_v5  ;;  %v126_v61 = vrot.slane %v33_v48, 6 }
  0xec   :  { %v263_v63 = vld [vmem:[#allocation1] sm:$0xff]  ;;  %v565_v21 = vrot.slane %v564_v13, 1 }
  0xed   :  { %264 = vst [vmem:[#allocation1] ss:$9 sm:$0xff] %v113_v60  ;;  %v567_v4 = vsel %vm412_vm0, %v263_v63, -inf }
  0xee   :  { %265 = vst [vmem:[#allocation1 + $0x1] ss:$9 sm:$0xff] %v980_v34  ;;  %v568_v6 = vrot.slane %v567_v4, 4  ;;  %v566_v27 = vmax.f32 %v564_v13, %v565_v21 }
  0xef   :  { %266 = vst [vmem:[#allocation1 + $0x2] ss:$9 sm:$0xff] %v1001_v35 }
  0xf0   :  { %v569_v11 = vmax.f32 %v567_v4, %v568_v6  ;;  %v819_v37 = vsel %vm801_vm3, %v566_v27, %v818_v30 }
  0xf2   :  { %v570_v15 = vrot.slane %v569_v11, 2 }
  0xf4   :  { %v571_v18 = vmax.f32 %v569_v11, %v570_v15 }
  0xf6   :  { %v267_v20 = vld [vmem:[#allocation1] sm:$0xff]  ;;  %v572_v26 = vrot.slane %v571_v18, 1 }
  0xf7   :  { %v574_v23 = vsel %vm412_vm0, %v267_v20, -inf  ;;  %268 = vst [vmem:[#allocation1] ss:$9 sm:$0xff] %v32_v12 }
  0xf8   :  { %v575_v24 = vrot.slane %v574_v23, 4  ;;  %269 = vst [vmem:[#allocation1 + $0x1] ss:$9 sm:$0xff] %v114_v17  ;;  %v573_v28 = vmax.f32 %v571_v18, %v572_v26 }
  0xf9   :  { %270 = vst [vmem:[#allocation1 + $0x2] ss:$9 sm:$0xff] %v115_v19 }
  0xfa   :  { %v576_v29 = vmax.f32 %v574_v23, %v575_v24  ;;  %v820_v42 = vsel %vm803_vm4, %v573_v28, %v819_v37 }
  0xfc   :  { %v577_v31 = vrot.slane %v576_v29, 2 }
  0xfe   :  { %v578_v32 = vmax.f32 %v576_v29, %v577_v31  ;;  %v128_v29 = vrot.slane %v34_v22, 1  ;;  %v129_v31 = vrot.slane %v34_v22, 2 }
 0x100   :  { %v579_v40 = vrot.slane %v578_v32, 1  ;;  %v271_v41 = vld [vmem:[#allocation1] sm:$0xff] }
 0x101   :  { %272 = vst [vmem:[#allocation1] ss:$9 sm:$0xff] %v116_v36  ;;  %v581_v54 = vsel %vm412_vm0, %v271_v41, -inf }
 0x102   :  { %v580_v43 = vmax.f32 %v578_v32, %v579_v40  ;;  %273 = vst [vmem:[#allocation1 + $0x1] ss:$9 sm:$0xff] %v117_v38  ;;  %v582_v58 = vrot.slane %v581_v54, 4 }
 0x103   :  { %274 = vst [vmem:[#allocation1 + $0x2] ss:$9 sm:$0xff] %v118_v39 }
 0x104   :  { %v821_v44 = vsel %vm805_vm5, %v580_v43, %v820_v42  ;;  %v583_v3 = vmax.f32 %v581_v54, %v582_v58  ;;  %v133_v58 = vrot.slane %v34_v22, 6 }
 0x105   :  { %v1092_v45 = vsel %vm850_vm6, %v821_v44, -inf }
 0x106   :  { %873 = vrot.lane.b32.xlu1 %v1092_v45, %s981_s0  ;;  %905 = vrot.lane.b32.xlu2 %v1092_v45, %s982_s13  ;;  %v584_v7 = vrot.slane %v583_v3, 2 }
 0x108   :  { %v585_v15 = vmax.f32 %v583_v3, %v584_v7 }
 0x10a   :  { %v275_v49 = vld [vmem:[#allocation1] sm:$0xff]  ;;  %v586_v19 = vrot.slane %v585_v15, 1 }
 0x10b   :  { %276 = vst [vmem:[#allocation1] ss:$9 sm:$0xff] %v119_v46  ;;  %v588_v55 = vsel %vm412_vm0, %v275_v49, -inf }
 0x10c   :  { %277 = vst [vmem:[#allocation1 + $0x1] ss:$9 sm:$0xff] %v120_v47  ;;  %v589_v59 = vrot.slane %v588_v55, 4  ;;  %v587_v26 = vmax.f32 %v585_v15, %v586_v19  ;;  %v130_v47 = vrot.slane %v34_v22, 3 }
 0x10d   :  { %278 = vst [vmem:[#allocation1 + $0x2] ss:$9 sm:$0xff] %v33_v48 }
 0x10e   :  { %v590_v4 = vmax.f32 %v588_v55, %v589_v59  ;;  %v134_v59 = vrot.slane %v34_v22, 7 }
 0x110   :  { %v591_v8 = vrot.slane %v590_v4, 2 }
 0x112   :  { %v592_v0 = vmax.f32 %v590_v4, %v591_v8 }
 0x114   :  { %v279_v53 = vld [vmem:[#allocation1] sm:$0xff]  ;;  %v593_v20 = vrot.slane %v592_v0, 1 }
 0x115   :  { %280 = vst [vmem:[#allocation1] ss:$9 sm:$0xff] %v121_v50  ;;  %v595_v60 = vsel %vm412_vm0, %v279_v53, -inf  ;;  %v131_v50 = vrot.slane %v34_v22, 4 }
 0x116   :  { %281 = vst [vmem:[#allocation1 + $0x1] ss:$9 sm:$0xff] %v122_v51  ;;  %v596_v63 = vrot.slane %v595_v60, 4  ;;  %v594_v27 = vmax.f32 %v592_v0, %v593_v20  ;;  %v132_v51 = vrot.slane %v34_v22, 5  ;;  %v37_v20 = vld [vmem:[#allocation2 + $0x68] sm:$0xff] }
 0x117   :  { %282 = vst [vmem:[#allocation1 + $0x2] ss:$9 sm:$0xff] %v123_v52 }
 0x118   :  { %v597_v6 = vmax.f32 %v595_v60, %v596_v63  ;;  %v822_v39 = vsel %vm797_vm1, %v594_v27, %v587_v26  ;;  %v35_v60 = vld [vmem:[#allocation2 + $0x58] sm:$0xff] }
 0x119   :  { %v136_v63 = vrot.slane %v35_v60, 2  ;;  %v138_v4 = vrot.slane %v35_v60, 4  ;;  %v141_v8 = vrot.slane %v35_v60, 7 }
 0x11a   :  { %v598_v12 = vrot.slane %v597_v6, 2 }
 0x11c   :  { %v599_v18 = vmax.f32 %v597_v6, %v598_v12  ;;  %v140_v6 = vrot.slane %v35_v60, 6 }
 0x11e   :  { %v283_v62 = vld [vmem:[#allocation1] sm:$0xff]  ;;  %v600_v25 = vrot.slane %v599_v18, 1 }
 0x11f   :  { %284 = vst [vmem:[#allocation1] ss:$9 sm:$0xff] %v124_v56  ;;  %v602_v2 = vsel %vm412_vm0, %v283_v62, -inf  ;;  %v135_v62 = vrot.slane %v35_v60, 1 }
 0x120   :  { %285 = vst [vmem:[#allocation1 + $0x1] ss:$9 sm:$0xff] %v125_v57  ;;  %v603_v5 = vrot.slane %v602_v2, 4  ;;  %v601_v32 = vmax.f32 %v599_v18, %v600_v25 }
 0x121   :  { %286 = vst [vmem:[#allocation1 + $0x2] ss:$9 sm:$0xff] %v126_v61 }
 0x122   :  { %v604_v11 = vmax.f32 %v602_v2, %v603_v5  ;;  %v823_v43 = vsel %vm799_vm2, %v601_v32, %v822_v39  ;;  %v137_v2 = vrot.slane %v35_v60, 3  ;;  %v139_v5 = vrot.slane %v35_v60, 5 }
 0x123   :  { %v154_v32 = vrot.slane %v37_v20, 6 }
 0x124   :  { %v605_v10 = vrot.slane %v604_v11, 2 }
 0x126   :  { %v606_v23 = vmax.f32 %v604_v11, %v605_v10  ;;  %v36_v11 = vld [vmem:[#allocation2 + $0x60] sm:$0xff] }
 0x127   :  { %v142_v12 = vrot.slane %v36_v11, 1  ;;  %v144_v0 = vrot.slane %v36_v11, 3  ;;  %v146_v10 = vrot.slane %v36_v11, 5  ;;  %v147_v18 = vrot.slane %v36_v11, 6 }
 0x128   :  { %v287_v13 = vld [vmem:[#allocation1] sm:$0xff]  ;;  %v607_v36 = vrot.slane %v606_v23, 1  ;;  %v148_v19 = vrot.slane %v36_v11, 7 }
 0x129   :  { %288 = vst [vmem:[#allocation1] ss:$9 sm:$0xff] %v127_v9  ;;  %v609_v1 = vsel %vm412_vm0, %v287_v13, -inf  ;;  %v143_v13 = vrot.slane %v36_v11, 2 }
 0x12a   :  { %289 = vst [vmem:[#allocation1 + $0x1] ss:$9 sm:$0xff] %v980_v34  ;;  %v610_v17 = vrot.slane %v609_v1, 4  ;;  %v608_v41 = vmax.f32 %v606_v23, %v607_v36  ;;  %v150_v23 = vrot.slane %v37_v20, 2 }
 0x12b   :  { %290 = vst [vmem:[#allocation1 + $0x2] ss:$9 sm:$0xff] %v1001_v35 }
 0x12c   :  { %v611_v21 = vmax.f32 %v609_v1, %v610_v17  ;;  %v824_v49 = vsel %vm801_vm3, %v608_v41, %v823_v43  ;;  %v145_v1 = vrot.slane %v36_v11, 4 }
 0x12e   :  { %v612_v24 = vrot.slane %v611_v21, 2 }
 0x130   :  { %v613_v30 = vmax.f32 %v611_v21, %v612_v24  ;;  %v151_v24 = vrot.slane %v37_v20, 3 }
 0x132   :  { %v291_v28 = vld [vmem:[#allocation1] sm:$0xff]  ;;  %v614_v40 = vrot.slane %v613_v30, 1 }
 0x133   :  { %v616_v37 = vsel %vm412_vm0, %v291_v28, -inf  ;;  %292 = vst [vmem:[#allocation1] ss:$9 sm:$0xff] %v34_v22  ;;  %v149_v22 = vrot.slane %v37_v20, 1 }
 0x134   :  { %v617_v38 = vrot.slane %v616_v37, 4  ;;  %293 = vst [vmem:[#allocation1 + $0x1] ss:$9 sm:$0xff] %v128_v29  ;;  %v615_v46 = vmax.f32 %v613_v30, %v614_v40  ;;  %v152_v29 = vrot.slane %v37_v20, 4  ;;  %v153_v30 = vrot.slane %v37_v20, 5 }
 0x135   :  { %294 = vst [vmem:[#allocation1 + $0x2] ss:$9 sm:$0xff] %v129_v31 }
 0x136   :  { %v618_v42 = vmax.f32 %v616_v37, %v617_v38  ;;  %v825_v54 = vsel %vm803_vm4, %v615_v46, %v824_v49 }
 0x138   :  { %v619_v44 = vrot.slane %v618_v42, 2 }
 0x13a   :  { %v620_v48 = vmax.f32 %v618_v42, %v619_v44 }
 0x13c   :  { %v621_v52 = vrot.slane %v620_v48, 1  ;;  %v1109_v53 = vld [vmem:[#allocation1] sm:$0xff] }
 0x13d   :  { %296 = vst [vmem:[#allocation1] ss:$9 sm:$0xff] %v130_v47  ;;  %v155_v47 = vrot.slane %v37_v20, 7 }
 0x13e   :  { %v622_v55 = vmax.f32 %v620_v48, %v621_v52  ;;  %297 = vst [vmem:[#allocation1 + $0x1] ss:$9 sm:$0xff] %v131_v50 }
 0x13f   :  { %298 = vst [vmem:[#allocation1 + $0x2] ss:$9 sm:$0xff] %v132_v51 }
 0x140   :  { %v826_v56 = vsel %vm805_vm5, %v622_v55, %v825_v54 }
 0x141   :  { %v1114_v57 = vsel %vm850_vm6, %v826_v56, -inf }
 0x142   :  { %907 = vrot.lane.b32.xlu0 %v1114_v57, %s982_s13  ;;  %875 = vrot.lane.b32.xlu2 %v1114_v57, %s981_s0 }
 0x146   :  { %v1120_v61 = vld [vmem:[#allocation1] sm:$0xff] }
 0x147   :  { %300 = vst [vmem:[#allocation1] ss:$9 sm:$0xff] %v133_v58 }
 0x148   :  { %301 = vst [vmem:[#allocation1 + $0x1] ss:$9 sm:$0xff] %v134_v59 }
 0x149   :  { %302 = vst [vmem:[#allocation1 + $0x2] ss:$9 sm:$0xff] %v35_v60 }
 0x150   :  { %v1122_v3 = vld [vmem:[#allocation1] sm:$0xff] }
 0x151   :  { %304 = vst [vmem:[#allocation1] ss:$9 sm:$0xff] %v135_v62 }
 0x152   :  { %305 = vst [vmem:[#allocation1 + $0x1] ss:$9 sm:$0xff] %v136_v63  ;;  %v38_v63 = vld [vmem:[#allocation2 + $0x70] sm:$0xff] }
 0x153   :  { %306 = vst [vmem:[#allocation1 + $0x2] ss:$9 sm:$0xff] %v137_v2 }
 0x15a   :  { %v1124_v7 = vld [vmem:[#allocation1] sm:$0xff] }
 0x15b   :  { %308 = vst [vmem:[#allocation1] ss:$9 sm:$0xff] %v138_v4 }
 0x15c   :  { %309 = vst [vmem:[#allocation1 + $0x1] ss:$9 sm:$0xff] %v139_v5 }
 0x15d   :  { %310 = vst [vmem:[#allocation1 + $0x2] ss:$9 sm:$0xff] %v140_v6 }
 0x164   :  { %v1126_v9 = vld [vmem:[#allocation1] sm:$0xff] }
 0x165   :  { %312 = vst [vmem:[#allocation1] ss:$9 sm:$0xff] %v141_v8 }
 0x166   :  { %313 = vst [vmem:[#allocation1 + $0x1] ss:$9 sm:$0xff] %v980_v34 }
 0x167   :  { %314 = vst [vmem:[#allocation1 + $0x2] ss:$9 sm:$0xff] %v1001_v35 }
 0x16e   :  { %v1130_v15 = vld [vmem:[#allocation1] sm:$0xff] }
 0x16f   :  { %316 = vst [vmem:[#allocation1] ss:$9 sm:$0xff] %v36_v11  ;;  %v156_v11 = vrot.slane %v38_v63, 1 }
 0x170   :  { %317 = vst [vmem:[#allocation1 + $0x1] ss:$9 sm:$0xff] %v142_v12 }
 0x171   :  { %318 = vst [vmem:[#allocation1 + $0x2] ss:$9 sm:$0xff] %v143_v13  ;;  %v157_v13 = vrot.slane %v38_v63, 2 }
 0x178   :  { %v319_v17 = vld [vmem:[#allocation1] sm:$0xff] }
 0x179   :  { %320 = vst [vmem:[#allocation1] ss:$9 sm:$0xff] %v144_v0  ;;  %v665_v26 = vsel %vm412_vm0, %v319_v17, -inf }
 0x17a   :  { %321 = vst [vmem:[#allocation1 + $0x1] ss:$9 sm:$0xff] %v145_v1  ;;  %v666_v31 = vrot.slane %v665_v26, 4 }
 0x17b   :  { %322 = vst [vmem:[#allocation1 + $0x2] ss:$9 sm:$0xff] %v146_v10 }
 0x17c   :  { %v667_v40 = vmax.f32 %v665_v26, %v666_v31  ;;  %v158_v26 = vrot.slane %v38_v63, 3  ;;  %v160_v31 = vrot.slane %v38_v63, 5 }
 0x17e   :  { %v668_v44 = vrot.slane %v667_v40, 2 }
 0x180   :  { %v669_v51 = vmax.f32 %v667_v40, %v668_v44  ;;  %v161_v40 = vrot.slane %v38_v63, 6 }
 0x182   :  { %v323_v21 = vld [vmem:[#allocation1] sm:$0xff]  ;;  %v670_v59 = vrot.slane %v669_v51, 1 }
 0x183   :  { %324 = vst [vmem:[#allocation1] ss:$9 sm:$0xff] %v147_v18  ;;  %v672_v27 = vsel %vm412_vm0, %v323_v21, -inf }
 0x184   :  { %325 = vst [vmem:[#allocation1 + $0x1] ss:$9 sm:$0xff] %v148_v19  ;;  %v673_v28 = vrot.slane %v672_v27, 4  ;;  %v671_v6 = vmax.f32 %v669_v51, %v670_v59  ;;  %v630_v51 = vsel %vm412_vm0, %v1120_v61, -inf  ;;  %v637_v59 = vsel %vm412_vm0, %v1122_v3, -inf }
 0x185   :  { %326 = vst [vmem:[#allocation1 + $0x2] ss:$9 sm:$0xff] %v37_v20 }
 0x186   :  { %v674_v41 = vmax.f32 %v672_v27, %v673_v28 }
 0x188   :  { %v675_v46 = vrot.slane %v674_v41, 2 }
 0x18a   :  { %v676_v52 = vmax.f32 %v674_v41, %v675_v46  ;;  %v162_v41 = vrot.slane %v38_v63, 7 }
 0x18c   :  { %v327_v25 = vld [vmem:[#allocation1] sm:$0xff]  ;;  %v677_v60 = vrot.slane %v676_v52, 1 }
 0x18d   :  { %328 = vst [vmem:[#allocation1] ss:$9 sm:$0xff] %v149_v22  ;;  %v679_v36 = vsel %vm412_vm0, %v327_v25, -inf }
 0x18e   :  { %329 = vst [vmem:[#allocation1 + $0x1] ss:$9 sm:$0xff] %v150_v23  ;;  %v680_v38 = vrot.slane %v679_v36, 4  ;;  %v678_v8 = vmax.f32 %v676_v52, %v677_v60  ;;  %v644_v60 = vsel %vm412_vm0, %v1124_v7, -inf }
 0x18f   :  { %330 = vst [vmem:[#allocation1 + $0x2] ss:$9 sm:$0xff] %v151_v24 }
 0x190   :  { %v681_v43 = vmax.f32 %v679_v36, %v680_v38  ;;  %v832_v19 = vsel %vm797_vm1, %v678_v8, %v671_v6  ;;  %v651_v6 = vsel %vm412_vm0, %v1126_v9, -inf }
 0x191   :  { %v652_v3 = vrot.slane %v651_v6, 4 }
 0x192   :  { %v682_v49 = vrot.slane %v681_v43, 2 }
 0x194   :  { %v683_v58 = vmax.f32 %v681_v43, %v682_v49 }
 0x196   :  { %v331_v37 = vld [vmem:[#allocation1] sm:$0xff]  ;;  %v684_v5 = vrot.slane %v683_v58, 1 }
 0x197   :  { %332 = vst [vmem:[#allocation1] ss:$9 sm:$0xff] %v152_v29  ;;  %v686_v39 = vsel %vm412_vm0, %v331_v37, -inf }
 0x198   :  { %333 = vst [vmem:[#allocation1 + $0x1] ss:$9 sm:$0xff] %v153_v30  ;;  %v687_v42 = vrot.slane %v686_v39, 4  ;;  %v685_v10 = vmax.f32 %v683_v58, %v684_v5  ;;  %v159_v30 = vrot.slane %v38_v63, 4  ;;  %v631_v58 = vrot.slane %v630_v51, 4 }
 0x199   :  { %334 = vst [vmem:[#allocation1 + $0x2] ss:$9 sm:$0xff] %v154_v32  ;;  %v645_v5 = vrot.slane %v644_v60, 4 }
 0x19a   :  { %v688_v48 = vmax.f32 %v686_v39, %v687_v42  ;;  %v833_v23 = vsel %vm799_vm2, %v685_v10, %v832_v19  ;;  %v1150_v42 = vld [vmem:[#allocation2 + $0x78] sm:$0xff]  ;;  %v653_v19 = vmax.f32 %v651_v6, %v652_v3  ;;  %v872_v6 = vpop.permute.xlu1 %871 }
 0x19b   :  { %v163_v44 = vrot.slane %v1150_v42, 1  ;;  %v164_v46 = vrot.slane %v1150_v42, 2  ;;  %v166_v52 = vrot.slane %v1150_v42, 4  ;;  %v646_v7 = vmax.f32 %v644_v60, %v645_v5  ;;  %v868_v5 = vpop.permute.xlu0 %867 }
 0x19c   :  { %v689_v55 = vrot.slane %v688_v48, 2  ;;  %v891_v3 = vmax.f32 %v1015_v14, %v868_v5 }
 0x19e   :  { %v690_v2 = vmax.f32 %v688_v48, %v689_v55 }
 0x1a0   :  { %v335_v50 = vld [vmem:[#allocation1] sm:$0xff]  ;;  %v691_v1 = vrot.slane %v690_v2, 1 }
 0x1a1   :  { %336 = vst [vmem:[#allocation1] ss:$9 sm:$0xff] %v155_v47  ;;  %v693_v54 = vsel %vm412_vm0, %v335_v50, -inf  ;;  %v165_v47 = vrot.slane %v1150_v42, 3  ;;  %v623_v50 = vsel %vm412_vm0, %v1109_v53, -inf  ;;  %v168_v53 = vrot.slane %v1150_v42, 6 }
 0x1a2   :  { %337 = vst [vmem:[#allocation1 + $0x1] ss:$9 sm:$0xff] %v980_v34  ;;  %v694_v56 = vrot.slane %v693_v54, 4  ;;  %v692_v21 = vmax.f32 %v690_v2, %v691_v1  ;;  %v624_v55 = vrot.slane %v623_v50, 4  ;;  %v632_v2 = vmax.f32 %v630_v51, %v631_v58 }
 0x1a3   :  { %338 = vst [vmem:[#allocation1 + $0x2] ss:$9 sm:$0xff] %v1001_v35  ;;  %v658_v1 = vsel %vm412_vm0, %v1130_v15, -inf }
 0x1a4   :  { %v695_v62 = vmax.f32 %v693_v54, %v694_v56  ;;  %v834_v29 = vsel %vm801_vm3, %v692_v21, %v833_v23  ;;  %v625_v61 = vmax.f32 %v623_v50, %v624_v55  ;;  %v647_v23 = vrot.slane %v646_v7, 2 }
 0x1a6   :  { %v696_v4 = vrot.slane %v695_v62, 2  ;;  %v648_v15 = vmax.f32 %v646_v7, %v647_v23  ;;  %v904_v23 = vpop.permute.xlu1 %903 }
 0x1a8   :  { %v697_v12 = vmax.f32 %v695_v62, %v696_v4  ;;  %v167_v62 = vrot.slane %v1150_v42, 5  ;;  %v638_v4 = vrot.slane %v637_v59, 4 }
 0x1aa   :  { %v339_v0 = vld [vmem:[#allocation1] sm:$0xff]  ;;  %v698_v20 = vrot.slane %v697_v12, 1 }
 0x1ab   :  { %v700_v17 = vsel %vm412_vm0, %v339_v0, -inf  ;;  %340 = vst [vmem:[#allocation1] ss:$9 sm:$0xff] %v38_v63  ;;  %v639_v0 = vmax.f32 %v637_v59, %v638_v4 }
 0x1ac   :  { %v701_v18 = vrot.slane %v700_v17, 4  ;;  %341 = vst [vmem:[#allocation1 + $0x1] ss:$9 sm:$0xff] %v156_v11  ;;  %v699_v25 = vmax.f32 %v697_v12, %v698_v20  ;;  %v626_v12 = vrot.slane %v625_v61, 2  ;;  %v659_v20 = vrot.slane %v658_v1, 4 }
 0x1ad   :  { %342 = vst [vmem:[#allocation1 + $0x2] ss:$9 sm:$0xff] %v157_v13  ;;  %v633_v13 = vrot.slane %v632_v2, 2  ;;  %v640_v9 = vrot.slane %v639_v0, 2 }
 0x1ae   :  { %v702_v22 = vmax.f32 %v700_v17, %v701_v18  ;;  %v835_v32 = vsel %vm803_vm4, %v699_v25, %v834_v29  ;;  %v627_v18 = vmax.f32 %v625_v61, %v626_v12 }
 0x1b0   :  { %v703_v24 = vrot.slane %v702_v22, 2 }
 0x1b2   :  { %v704_v27 = vmax.f32 %v702_v22, %v703_v24  ;;  %v634_v22 = vmax.f32 %v632_v2, %v633_v13  ;;  %v900_v13 = vpop.permute.xlu2 %899 }
 0x1b4   :  { %v705_v28 = vrot.slane %v704_v27, 1  ;;  %v343_v36 = vld [vmem:[#allocation1] sm:$0xff]  ;;  %v635_v29 = vrot.slane %v634_v22, 1 }
 0x1b5   :  { %344 = vst [vmem:[#allocation1] ss:$9 sm:$0xff] %v158_v26  ;;  %v707_v49 = vsel %vm412_vm0, %v343_v36, -inf  ;;  %v628_v26 = vrot.slane %v627_v18, 1 }
 0x1b6   :  { %v706_v37 = vmax.f32 %v704_v27, %v705_v28  ;;  %345 = vst [vmem:[#allocation1 + $0x1] ss:$9 sm:$0xff] %v159_v30  ;;  %v708_v54 = vrot.slane %v707_v49, 4  ;;  %v654_v27 = vrot.slane %v653_v19, 2  ;;  %v641_v30 = vmax.f32 %v639_v0, %v640_v9  ;;  %v870_v9 = vpop.permute.xlu0 %869 }
 0x1b7   :  { %346 = vst [vmem:[#allocation1 + $0x2] ss:$9 sm:$0xff] %v160_v31  ;;  %v660_v31 = vmax.f32 %v658_v1, %v659_v20 }
 0x1b8   :  { %v836_v38 = vsel %vm805_vm5, %v706_v37, %v835_v32  ;;  %v709_v8 = vmax.f32 %v707_v49, %v708_v54  ;;  %v629_v32 = vmax.f32 %v627_v18, %v628_v26  ;;  %v655_v37 = vmax.f32 %v653_v19, %v654_v27 }
 0x1b9   :  { %v1146_v39 = vsel %vm850_vm6, %v836_v38, -inf  ;;  %v636_v38 = vmax.f32 %v634_v22, %v635_v29  ;;  %v893_v18 = vmax.f32 %v1072_v33, %v872_v6 }
 0x1ba   :  { %879 = vrot.lane.b32.xlu0 %v1146_v39, %s981_s0  ;;  %v710_v24 = vrot.slane %v709_v8, 2  ;;  %v906_v33 = vpop.permute.xlu2 %905 }
 0x1bb   :  { %v827_v51 = vsel %vm797_vm1, %v636_v38, %v629_v32  ;;  %v925_v26 = vmax.f32 %v893_v18, %v904_v23 }
 0x1bc   :  { %v711_v55 = vmax.f32 %v709_v8, %v710_v24 }
 0x1bd   :  { %934 = vst.msk [vmem:[%s1242_s1 + $0x10] sm:$0x3f] %vm931_vm7, %v925_v26 }
 0x1be   :  { %v347_v43 = vld [vmem:[#allocation1] sm:$0xff]  ;;  %v712_v8 = vrot.slane %v711_v55, 1 }
 0x1bf   :  { %348 = vst [vmem:[#allocation1] ss:$9 sm:$0xff] %v161_v40  ;;  %v714_v56 = vsel %vm412_vm0, %v347_v43, -inf  ;;  %v642_v40 = vrot.slane %v641_v30, 1  ;;  %v661_v43 = vrot.slane %v660_v31, 2 }
 0x1c0   :  { %349 = vst [vmem:[#allocation1 + $0x1] ss:$9 sm:$0xff] %v162_v41  ;;  %v715_v11 = vrot.slane %v714_v56, 4  ;;  %v649_v41 = vrot.slane %v648_v15, 1  ;;  %v713_v14 = vmax.f32 %v711_v55, %v712_v8 }
 0x1c1   :  { %350 = vst [vmem:[#allocation1 + $0x2] ss:$9 sm:$0xff] %v1150_v42  ;;  %v662_v50 = vmax.f32 %v660_v31, %v661_v43  ;;  %v874_v43 = vpop.permute.xlu1 %873 }
 0x1c2   :  { %v716_v25 = vmax.f32 %v714_v56, %v715_v11  ;;  %v650_v49 = vmax.f32 %v648_v15, %v649_v41  ;;  %v902_v41 = vpop.permute.xlu0 %901 }
 0x1c3   :  { %v663_v58 = vrot.slane %v662_v50, 1 }
 0x1c8   :  { %v351_v48 = vld [vmem:[#allocation1] sm:$0xff] }
 0x1c9   :  { %352 = vst [vmem:[#allocation1] ss:$9 sm:$0xff] %v163_v44  ;;  %v721_v63 = vsel %vm412_vm0, %v351_v48, -inf  ;;  %v169_v44 = vrot.slane %v1150_v42, 7  ;;  %v643_v48 = vmax.f32 %v641_v30, %v642_v40 }
 0x1ca   :  { %353 = vst [vmem:[#allocation1 + $0x1] ss:$9 sm:$0xff] %v164_v46  ;;  %v722_v17 = vrot.slane %v721_v63, 4  ;;  %v717_v46 = vrot.slane %v716_v25, 2 }
 0x1cb   :  { %354 = vst [vmem:[#allocation1 + $0x2] ss:$9 sm:$0xff] %v165_v47  ;;  %v656_v47 = vrot.slane %v655_v37, 1  ;;  %v828_v59 = vsel %vm799_vm2, %v643_v48, %v827_v51 }
 0x1cc   :  { %v723_v28 = vmax.f32 %v721_v63, %v722_v17  ;;  %v664_v63 = vmax.f32 %v662_v50, %v663_v58  ;;  %v876_v50 = vpop.permute.xlu2 %875 }
 0x1cd   :  { %v657_v54 = vmax.f32 %v655_v37, %v656_v47  ;;  %v895_v51 = vmax.f32 %v1114_v57, %v876_v50 }
 0x1ce   :  { %v724_v56 = vrot.slane %v723_v28, 2 }
 0x1d0   :  { %v725_v11 = vmax.f32 %v723_v28, %v724_v56 }
 0x1d2   :  { %v355_v10 = vld [vmem:[#allocation1] sm:$0xff] }
 0x1d3   :  { %356 = vst [vmem:[#allocation1] ss:$9 sm:$0xff] %v166_v52  ;;  %v728_v21 = vsel %vm412_vm0, %v355_v10, -inf }
 0x1d4   :  { %357 = vst [vmem:[#allocation1 + $0x1] ss:$9 sm:$0xff] %v167_v62  ;;  %v729_v36 = vrot.slane %v728_v21, 4  ;;  %v718_v62 = vmax.f32 %v716_v25, %v717_v46  ;;  %v894_v46 = vmax.f32 %v1092_v45, %v874_v43 }
 0x1d5   :  { %358 = vst [vmem:[#allocation1 + $0x2] ss:$9 sm:$0xff] %v168_v53  ;;  %v829_v53 = vsel %vm801_vm3, %v650_v49, %v828_v59 }
 0x1d6   :  { %v730_v52 = vmax.f32 %v728_v21, %v729_v36  ;;  %v830_v61 = vsel %vm803_vm4, %v657_v54, %v829_v53  ;;  %v719_v0 = vrot.slane %v718_v62, 1  ;;  %v892_v36 = vmax.f32 %v1061_v16, %v870_v9  ;;  %v908_v54 = vpop.permute.xlu0 %907 }
 0x1d7   :  { %v831_v12 = vsel %vm805_vm5, %v664_v63, %v830_v61  ;;  %v926_v49 = vmax.f32 %v894_v46, %v906_v33  ;;  %v927_v55 = vmax.f32 %v895_v51, %v908_v54 }
 0x1d8   :  { %v731_v2 = vrot.slane %v730_v52, 2  ;;  %v1186_v1 = vsel %vm850_vm6, %v831_v12, -inf  ;;  %v720_v19 = vmax.f32 %v718_v62, %v719_v0 }
 0x1d9   :  { %877 = vrot.lane.b32.xlu2 %v1186_v1, %s981_s0  ;;  %935 = vst.msk [vmem:[%s1242_s1 + $0x18] sm:$0x3f] %vm931_vm7, %v926_v49 }
 0x1da   :  { %v732_v10 = vmax.f32 %v730_v52, %v731_v2  ;;  %v837_v29 = vsel %vm797_vm1, %v720_v19, %v713_v14  ;;  %936 = vst.msk [vmem:[%s1242_s1 + $0x20] sm:$0x3f] %vm931_vm7, %v927_v55 }
 0x1dc   :  { %v359_v60 = vld [vmem:[#allocation1] sm:$0xff]  ;;  %v733_v22 = vrot.slane %v732_v10, 1 }
 0x1dd   :  { %360 = vst [vmem:[#allocation1] ss:$9 sm:$0xff] %v169_v44  ;;  %v735_v42 = vsel %vm412_vm0, %v359_v60, -inf  ;;  %v924_v44 = vmax.f32 %v892_v36, %v902_v41 }
 0x1de   :  { %361 = vst [vmem:[#allocation1 + $0x1] ss:$9 sm:$0xff] %v980_v34  ;;  %v736_v4 = vrot.slane %v735_v42, 4  ;;  %v923_v34 = vmax.f32 %v891_v3, %v900_v13  ;;  %v734_v15 = vmax.f32 %v732_v10, %v733_v22 }
 0x1df   :  { %362 = vst [vmem:[#allocation1 + $0x2] ss:$9 sm:$0xff] %v1001_v35  ;;  %v726_v35 = vrot.slane %v725_v11, 1 }
 0x1e0   :  { %v737_v7 = vmax.f32 %v735_v42, %v736_v4  ;;  %932 = vst.msk [vmem:[%s1242_s1] sm:$0x3f] %vm931_vm7, %v923_v34 }
 0x1e1   :  { %v727_v24 = vmax.f32 %v725_v11, %v726_v35  ;;  %911 = vrot.lane.b32.xlu2 %v1146_v39, %s982_s13  ;;  %933 = vst.msk [vmem:[%s1242_s1 + $0x8] sm:$0x3f] %vm931_vm7, %v924_v44 }
 0x1e2   :  { %v738_v17 = vrot.slane %v737_v7, 2 }
 0x1e3   :  { %v838_v28 = vsel %vm799_vm2, %v727_v24, %v837_v29 }
 0x1e4   :  { %v739_v20 = vmax.f32 %v737_v7, %v738_v17  ;;  %v839_v40 = vsel %vm801_vm3, %v734_v15, %v838_v28 }
 0x1e6   :  { %v363_v21 = vld [vmem:[#allocation1] sm:$0xff]  ;;  %v740_v30 = vrot.slane %v739_v20, 1 }
 0x1e7   :  { %v742_v25 = vsel %vm412_vm0, %v363_v21, -inf }
 0x1e8   :  { %v743_v27 = vrot.slane %v742_v25, 4  ;;  %v741_v37 = vmax.f32 %v739_v20, %v740_v30 }
 0x1ea   :  { %v744_v31 = vmax.f32 %v742_v25, %v743_v27  ;;  %v840_v48 = vsel %vm803_vm4, %v741_v37, %v839_v40 }
 0x1ec   :  { %v745_v32 = vrot.slane %v744_v31, 2 }
 0x1ee   :  { %v746_v38 = vmax.f32 %v744_v31, %v745_v32 }
 0x1f0   :  { %v747_v47 = vrot.slane %v746_v38, 1 }
 0x1f2   :  { %v748_v16 = vmax.f32 %v746_v38, %v747_v47 }
 0x1f4   :  { %v841_v45 = vsel %vm805_vm5, %v748_v16, %v840_v48 }
 0x1f5   :  { %v858_v52 = vsel %vm850_vm6, %v841_v45, -inf }
 0x1f6   :  { %881 = vrot.lane.b32.xlu1 %v858_v52, %s981_s0  ;;  %913 = vrot.lane.b32.xlu0 %v858_v52, %s982_s13 }
 0x1fe   :  { %909 = vrot.lane.b32.xlu1 %v1186_v1, %s982_s13 }
 0x22c   :  { %v880_v57 = vpop.permute.xlu0 %879 }
 0x22d   :  { %v897_v58 = vmax.f32 %v1146_v39, %v880_v57 }
 0x233   :  { %v878_v56 = vpop.permute.xlu2 %877 }
 0x234   :  { %v896_v61 = vmax.f32 %v1186_v1, %v878_v56 }
 0x23b   :  { %v912_v59 = vpop.permute.xlu2 %911 }
 0x23c   :  { %v929_v60 = vmax.f32 %v897_v58, %v912_v59 }
 0x23e   :  { %938 = vst.msk [vmem:[%s1242_s1 + $0x30] sm:$0x3f] %vm931_vm7, %v929_v60 }
 0x268   :  { %v882_v62 = vpop.permute.xlu1 %881  ;;  %v914_v53 = vpop.permute.xlu0 %913 }
 0x269   :  { %v898_v42 = vmax.f32 %v858_v52, %v882_v62 }
 0x26b   :  { %v930_v63 = vmax.f32 %v898_v42, %v914_v53 }
 0x26d   :  { %939 = vst.msk [vmem:[%s1242_s1 + $0x38] sm:$0x3f] %vm931_vm7, %v930_v63 }
 0x270   :  { %v910_v2 = vpop.permute.xlu1 %909 }
 0x271   :  { %v928_v39 = vmax.f32 %v896_v61, %v910_v2 }
 0x273   :  { %937 = vst.msk [vmem:[%s1242_s1 + $0x28] sm:$0x3f] %vm931_vm7, %v928_v39 }
 0x274   :  { %944 = vsyncpa [#allocation3], 1 }

</bundles_post_ra>
